<compile_context>
chip_gen: v6e
topology: v6e:2x2x1
jax: 0.10.0
libtpu: 0.0.40
codegen_flags: <defaults>
</compile_context>

<pallas_src>
import jax
import jax.numpy as jnp
from jax.experimental import pallas as pl
from jax.experimental.pallas import tpu as pltpu


def _quadratic_kernel(w_ref, b_ref, x_ref, o_ref):
    # w_ref, b_ref: shape-(1,) scalars in SMEM; x_ref/o_ref: (TR, LANE) VMEM tiles.
    w = w_ref[0]
    b = b_ref[0]
    x = x_ref[...].astype(jnp.float32)          # compute in f32 on the VPU
    o_ref[...] = (w * (x * x) + b).astype(o_ref.dtype)


def quadratic_forward(x: jax.Array, weight: jax.Array, bias: jax.Array) -> jax.Array:
    """y = weight * x*x + bias, elementwise. weight/bias are shape-(1,) f32."""
    orig_shape = x.shape
    orig_dtype = x.dtype
    n = x.size
    itemsize = jnp.dtype(orig_dtype).itemsize

    # ---- choose a lane-dense 2-D layout, avoiding pad/slice copies if possible
    lane_candidates = (2048, 1024, 512, 256, 128)
    if n % 128 == 0:
        lane = next(c for c in lane_candidates if n % c == 0)
        n_pad = n
        x2d = jnp.reshape(x, (-1, lane))
    else:
        # Ragged tail: pad only up to the 128-lane boundary.
        lane = 128
        n_pad = pl.cdiv(n, lane) * lane
        x2d = jnp.pad(jnp.ravel(x), (0, n_pad - n)).reshape(-1, lane)
    rows = n_pad // lane

    # ---- tile the row axis: ~1 MiB per input buffer, multiple of 8 sublanes.
    # 2 in-bufs + 2 out-bufs of this size stay far under every chip's scoped
    # VMEM default (16 MiB v5e / 32 MiB v6e,v7x).
    target_bytes = 1 << 20
    tr = max(8, (target_bytes // (lane * itemsize)) // 8 * 8)
    if tr >= rows:
        tr = rows  # single block along rows == full dim (always legal)
    grid = (pl.cdiv(rows, tr),)

    out2d = pl.pallas_call(
        _quadratic_kernel,
        out_shape=jax.ShapeDtypeStruct((rows, lane), orig_dtype),
        grid_spec=pltpu.PrefetchScalarGridSpec(
            num_scalar_prefetch=0,
            grid=grid,
            in_specs=[
                pl.BlockSpec(memory_space=pltpu.SMEM),          # weight (1,)
                pl.BlockSpec(memory_space=pltpu.SMEM),          # bias   (1,)
                pl.BlockSpec((tr, lane), lambda i: (i, 0)),     # x tile
            ],
            out_specs=pl.BlockSpec((tr, lane), lambda i: (i, 0)),
        ),
        compiler_params=pltpu.CompilerParams(
            dimension_semantics=("parallel",)),
        cost_estimate=pl.CostEstimate(
            flops=2 * n,
            transcendentals=0,
            bytes_accessed=2 * n * itemsize),
    )(weight.astype(jnp.float32), bias.astype(jnp.float32), x2d)

    if n_pad != n:
        out = out2d.reshape(-1)[:n].reshape(orig_shape)
    else:
        out = out2d.reshape(orig_shape)
    return out


if __name__ == "__main__":
    key = jax.random.PRNGKey(0)
    kx, kw, kb = jax.random.split(key, 3)

    # Deterministic stand-ins for "random.random()*2 - 1" module params.
    weight = jax.random.uniform(kw, (1,), jnp.float32, minval=-1.0, maxval=1.0)
    bias = jax.random.uniform(kb, (1,), jnp.float32, minval=-1.0, maxval=1.0)

    # Small NCHW input consistent with a typical forward call.
    x = jax.random.normal(kx, (2, 4, 16, 16), jnp.float32)

    y = quadratic_forward(x, weight, bias)
    y = jax.block_until_ready(y)

    # Reference check in plain JAX.
    y_ref = weight[0] * (x * x) + bias[0]
    assert y.shape == x.shape and y.dtype == x.dtype
    assert jnp.allclose(y, y_ref, atol=1e-6, rtol=1e-6)

    print("KERNEL_OK")
</pallas_src>

<mosaic_0001>
module attributes {stable_mosaic.version = 11 : i64} {
  func.func @_quadratic_kernel(%arg0: i32, %arg1: memref<1xf32, #tpu.memory_space<smem>>, %arg2: memref<1xf32, #tpu.memory_space<smem>>, %arg3: memref<1x2048xf32, #tpu.memory_space<vmem>>, %arg4: memref<1x2048xf32, #tpu.memory_space<vmem>>) attributes {dimension_semantics = [#tpu.dimension_semantics<parallel>], iteration_bounds = array<i64: 1>, scalar_prefetch = 0 : i64, scratch_operands = 0 : i64, tpu.core_type = #tpu.core_type<tc>, window_params = [{transform_indices = @transform_0, window_bounds = array<i64: 1>}, {transform_indices = @transform_1, window_bounds = array<i64: 1>}, {transform_indices = @transform_2, window_bounds = array<i64: 1, 2048>}, {transform_indices = @transform_3, window_bounds = array<i64: 1, 2048>}]} {
    %c0 = arith.constant 0 : index
    %0 = memref.load %arg1[%c0] : memref<1xf32, #tpu.memory_space<smem>>
    %c0_0 = arith.constant 0 : index
    %1 = memref.load %arg2[%c0_0] : memref<1xf32, #tpu.memory_space<smem>>
    %c0_1 = arith.constant 0 : index
    %c0_2 = arith.constant 0 : index
    %2 = vector.load %arg3[%c0_1, %c0_2] : memref<1x2048xf32, #tpu.memory_space<vmem>>, vector<1x2048xf32>
    %3 = arith.mulf %2, %2 : vector<1x2048xf32>
    %4 = vector.broadcast %0 : f32 to vector<1x2048xf32>
    %5 = arith.mulf %4, %3 : vector<1x2048xf32>
    %6 = vector.broadcast %1 : f32 to vector<1x2048xf32>
    %7 = arith.addf %5, %6 : vector<1x2048xf32>
    %c0_3 = arith.constant 0 : index
    %c0_4 = arith.constant 0 : index
    %8 = vector.load %arg4[%c0_3, %c0_4] : memref<1x2048xf32, #tpu.memory_space<vmem>>, vector<1x2048xf32>
    tpu.vector_store %arg4[%c0_3, %c0_4], %7 {strides = array<i32>} : memref<1x2048xf32, #tpu.memory_space<vmem>>, vector<1x2048xf32>,
    return
  }
  func.func @transform_0(%arg0: i32) -> i32 {
    %c0_i32 = arith.constant 0 : i32
    %c0_i32_0 = arith.constant 0 : i32
    return %c0_i32 : i32
  }
  func.func @transform_1(%arg0: i32) -> i32 {
    %c0_i32 = arith.constant 0 : i32
    %c0_i32_0 = arith.constant 0 : i32
    return %c0_i32 : i32
  }
  func.func @transform_2(%arg0: i32) -> (i32, i32) {
    %c0_i32 = arith.constant 0 : i32
    %c0_i32_0 = arith.constant 0 : i32
    return %arg0, %c0_i32 : i32, i32
  }
  func.func @transform_3(%arg0: i32) -> (i32, i32) {
    %c0_i32 = arith.constant 0 : i32
    %c0_i32_0 = arith.constant 0 : i32
    return %arg0, %c0_i32 : i32, i32
  }
}

</mosaic_0001>

<bundles_post_ra>
// kernel: tpu_custom_call.1
= control target key start
LH: loop header
LB: loop body
LE: loop exit
PB: predicated region body
PF: predicated region fallthrough
CT: control target
= control target key end

     0   :  { %10 = vsyncpa [#allocation5], 0  ;;  %s138_s0 = inlined_call_operand.<no memory space> [shape: f32[1], index: 0, kind: input, shape index: {}]   ;;  %s139_s1 = inlined_call_operand.<no memory space> [shape: f32[1], index: 1, kind: input, shape index: {}]   ;;  %s140_s2 = inlined_call_operand.hbm [shape: f32[1,2048], index: 2, kind: input, shape index: {}]   ;;  %s141_s3 = inlined_call_operand.hbm [shape: f32[1,2048], index: 3, kind: output, shape index: {}]  }
   0x1   :  { %11 = vsyncpa [#allocation6], 0  ;;  %s104_s12 = smov [#allocation4]  }
   0x2   :  { %s22_s13 = sshll.u32 %s104_s12, 4  ;;  %s23_s13 = int_to_ptr.vmem [resolvable:$true] %s22_s13 }
   0x3   :  { %s68_s14 = scalar_lea.vmem %s23_s13, 256  ;;  %p73_p1 = scmp.lt.s32.totalorder %s23_s13, %s23_s13 }
   0x4   :  { %p69_p0 = scmp.ne.s32.totalorder %s23_s13, %s68_s14  ;;  %p74_p2 = scmp.lt.s32.totalorder %s68_s14, %s68_s14 }
   0x6   :  { %p75_p3 = por %p74_p2, %p73_p1 }
   0x8   :  { %p76_p4 = pnand %p75_p3, %p69_p0 }
   0xa   :  { %79 = shalt.err (!%p76_p4)
}
   0xb   :  { %25 = dma.hbm_to_vmem [thread:$0]  %s140_s2, 256, %s23_s13, [#allocation5]  }
   0xc   :  { %100 = dma.done.wait [#allocation5], 256  }
   0xd   :  { %101 = vsyncadd [#allocation5], 4294967040  ;;  %v31_v0 = vld [vmem:[#allocation4] sm:$0xff]  ;;  %v35_v1 = vstv %s138_s0  ;;  %v32_v2 = vld [vmem:[#allocation4 + $0x8] sm:$0xff]  ;;  %v38_v5 = vstv %s139_s1  ;;  %s105_s21 = smov [#allocation7]  }
   0xe   :  { %v33_v3 = vmul.f32 %v31_v0, %v31_v0  ;;  %v34_v4 = vmul.f32 %v32_v2, %v32_v2  ;;  %s49_s22 = sshll.u32 %s105_s21, 4  ;;  %s50_s22 = int_to_ptr.vmem [resolvable:$true] %s49_s22 }
   0xf   :  { %s80_s2 = scalar_lea.vmem %s50_s22, 256  ;;  %p85_p6 = scmp.lt.s32.totalorder %s50_s22, %s50_s22 }
  0x10   :  { %v36_v6 = vmul.f32 %v35_v1, %v33_v3  ;;  %v37_v7 = vmul.f32 %v35_v1, %v34_v4  ;;  %p81_p5 = scmp.ne.s32.totalorder %s50_s22, %s80_s2  ;;  %p86_p7 = scmp.lt.s32.totalorder %s80_s2, %s80_s2 }
  0x12   :  { %v39_v8 = vadd.f32 %v38_v5, %v36_v6  ;;  %v40_v9 = vadd.f32 %v38_v5, %v37_v7  ;;  %p87_p8 = por %p86_p7, %p85_p6 }
  0x14   :  { %41 = vst [vmem:[#allocation7] sm:$0xff] %v39_v8  ;;  %42 = vst [vmem:[#allocation7 + $0x8] sm:$0xff] %v40_v9  ;;  %p88_p9 = pnand %p87_p8, %p81_p5 }
  0x16   :  { %91 = shalt.err (!%p88_p9)
}
  0x17   :  { %52 = dma.vmem_to_hbm [thread:$0]  %s50_s22, 256, %s141_s3, [#allocation6]  }
  0x18   :  { %102 = dma.done.wait [#allocation6], 256  }
  0x19   :  { %103 = vsyncadd [#allocation6], 4294967040 }
  0x1a   :  { %56 = vsyncpa [#allocation5], 1 }
  0x1b   :  { %57 = vsyncpa [#allocation6], 1 }

</bundles_post_ra>
